<compile_context>
chip_gen: v5e
topology: v5e:2x2
jax: 0.10.0
libtpu: 0.0.40
codegen_flags: <defaults>
</compile_context>

<pallas_src>
import functools

import jax
import jax.numpy as jnp
import numpy as np
from jax.experimental import pallas as pl
from jax.experimental.pallas import tpu as pltpu


def _round_up(a: int, b: int) -> int:
    return ((a + b - 1) // b) * b


def _mmd_kernel(i_idx_ref, j_idx_ref, a_ref, b_ref, anorm_ref, bnorm_ref,
                o_ref, acc_xx_ref, acc_yy_ref, acc_xy_ref, *, n, m, t, s2):
    step = pl.program_id(0)
    i = i_idx_ref[step]          # row-tile index (SMEM scalar prefetch)
    j = j_idx_ref[step]          # col-tile index, j >= i

    @pl.when(step == 0)
    def _init():
        acc_xx_ref[...] = jnp.zeros_like(acc_xx_ref)
        acc_yy_ref[...] = jnp.zeros_like(acc_yy_ref)
        acc_xy_ref[...] = jnp.zeros_like(acc_xy_ref)

    a = a_ref[...]               # (t, dp), native dtype (bf16 stays bf16)
    b = b_ref[...]               # (t, dp)

    # Gram tile on the MXU: contract the LAST axis of BOTH operands (A @ B^T
    # without any transpose copy), f32 accumulation.
    gram = jax.lax.dot_general(
        a, b,
        dimension_numbers=(((1,), (1,)), ((), ())),
        preferred_element_type=jnp.float32)                     # (t, t) f32

    # k = exp(-scale * (||a||^2 - 2 a.b + ||b||^2))
    #   = exp(2*scale*gram + (-scale*||a||^2) + (-scale*||b||^2))
    # (norms pre-scaled by -scale in the wrapper; s2 = 2*scale is static).
    kmat = jnp.exp(s2 * gram + anorm_ref[...] + bnorm_ref[...])  # EUP, f32

    # 1-D category masks (x rows/cols: [0, n); y: [n, n+m); padding excluded).
    row_ids = i * t + jax.lax.broadcasted_iota(jnp.int32, (t, 1), 0)
    col_ids = j * t + jax.lax.broadcasted_iota(jnp.int32, (1, t), 1)
    rowx = (row_ids < n).astype(jnp.float32)                              # (t,1)
    rowy = jnp.logical_and(row_ids >= n, row_ids < n + m).astype(jnp.float32)
    colx = (col_ids < n).astype(jnp.float32)                              # (1,t)
    coly = jnp.logical_and(col_ids >= n, col_ids < n + m).astype(jnp.float32)

    # Row-masked column sums (sublane reductions -> lane-dense (1,t) vectors).
    kxr = jnp.sum(kmat * rowx, axis=0, keepdims=True)   # (1, t)
    kyr = jnp.sum(kmat * rowy, axis=0, keepdims=True)   # (1, t)

    # Off-diagonal tiles stand in for their (j, i) mirror as well.
    factor = jnp.where(i == j, jnp.float32(1.0), jnp.float32(2.0))

    acc_xx_ref[...] += factor * (kxr * colx)
    acc_yy_ref[...] += factor * (kyr * coly)
    acc_xy_ref[...] += factor * (kxr * coly + kyr * colx)

    @pl.when(step == pl.num_programs(0) - 1)
    def _finalize():
        o_ref[0] = jnp.sum(acc_xx_ref[...])
        o_ref[1] = jnp.sum(acc_yy_ref[...])
        o_ref[2] = jnp.sum(acc_xy_ref[...])


def _mmd_reference(x, y, scale: float = 1.0):
    def rbf(a, b):
        an = jnp.sum(a * a, axis=1, keepdims=True)
        bn = jnp.sum(b * b, axis=1, keepdims=True)
        d = an - 2.0 * (a @ b.T) + bn.T
        return jnp.exp(-scale * d)

    return rbf(x, x).mean() + rbf(y, y).mean() - 2.0 * rbf(x, y).mean()


def mmd_loss(x, y, scale: float = 1.0, *, tile: int = 512,
             bf16_gram: bool = False, allow_small_fallback: bool = False):
    """MMD loss with RBF kernel: k_xx.mean() + k_yy.mean() - 2 * k_xy.mean().

    bf16_gram: for f32 inputs, run the Gram matmul in bf16 (MXU-native on
    v6e/v7x) while keeping norms and the exp path in f32 — small accuracy
    tradeoff in exchange for ~3-6x faster matmul.
    """
    assert x.ndim == 2 and y.ndim == 2 and x.shape[1] == y.shape[1]
    n, d = x.shape
    m = y.shape[0]
    p = n + m

    # Tiny problems are pure launch/padding overhead in a kernel; XLA fuses
    # them fine.  Off by default so the Pallas path is always exercised here.
    if allow_small_fallback and p * max(d, 1) <= 4096:
        return _mmd_reference(x, y, scale)

    dp = _round_up(max(d, 128), 128)
    itemsize = 2 if (bf16_gram or x.dtype == jnp.bfloat16) else jnp.dtype(x.dtype).itemsize

    if p <= tile:
        # Single Gram tile: pad rows to a sublane multiple only.
        t = _round_up(max(p, 8), 8)
        pp = t
    else:
        # Multi-tile grid: tile must be lane-aligned; cap it so
        # (2 operands x 2 buffers x t x dp) + ~4 f32 (t,t) intermediates
        # stays under a conservative VMEM budget (fits v7x's 64 MiB).
        t = _round_up(tile, 128)
        vmem_budget = 32 * 1024 * 1024

        def vmem_est(tt):
            return 2 * 2 * tt * dp * itemsize + 4 * tt * tt * 4

        while t > 128 and vmem_est(t) > vmem_budget:
            t -= 128
        pp = _round_up(p, t)

    # Fused, zero-padded operand z = [x; y] in the input dtype.
    z = jnp.zeros((pp, dp), dtype=x.dtype)
    z = z.at[:n, :d].set(x)
    z = z.at[n:p, :d].set(y)

    # Row norms once, in f32, pre-scaled by -scale, in both layouts.
    z32 = z.astype(jnp.float32)
    norms = jnp.sum(z32 * z32, axis=1)                    # (pp,)
    norms_col = (-scale) * norms[:, None]                 # (pp, 1) f32
    norms_row = (-scale) * norms[None, :]                 # (1, pp) f32

    # Optional bf16 Gram operands (norms / exp remain f32).
    if bf16_gram and z.dtype == jnp.float32:
        z_mm = z.astype(jnp.bfloat16)
    else:
        z_mm = z
    itemsize = jnp.dtype(z_mm.dtype).itemsize

    # Upper-triangular tile schedule, row-major so i changes slowest and the
    # A row-block (and its norms) stay resident across consecutive steps.
    nt = pp // t
    pairs = [(ii, jj) for ii in range(nt) for jj in range(ii, nt)]
    n_steps = len(pairs)
    i_idx = jnp.asarray(np.array([pq[0] for pq in pairs], dtype=np.int32))
    j_idx = jnp.asarray(np.array([pq[1] for pq in pairs], dtype=np.int32))

    grid_spec = pltpu.PrefetchScalarGridSpec(
        num_scalar_prefetch=2,
        grid=(n_steps,),
        in_specs=[
            pl.BlockSpec((t, dp), lambda s, ii, jj: (ii[s], 0)),   # A row-block
            pl.BlockSpec((t, dp), lambda s, ii, jj: (jj[s], 0)),   # B row-block
            pl.BlockSpec((t, 1), lambda s, ii, jj: (ii[s], 0)),    # -scale*norms (col)
            pl.BlockSpec((1, t), lambda s, ii, jj: (0, jj[s])),    # -scale*norms (row)
        ],
        out_specs=pl.BlockSpec(memory_space=pltpu.SMEM),
        scratch_shapes=[pltpu.VMEM((1, t), jnp.float32)] * 3,
    )

    cost = pl.CostEstimate(
        flops=2 * n_steps * t * t * dp,
        transcendentals=n_steps * t * t,
        bytes_accessed=(nt + n_steps) * t * dp * itemsize + 2 * pp * 4 + 3 * 4,
    )

    sums = pl.pallas_call(
        functools.partial(_mmd_kernel, n=n, m=m, t=t, s2=2.0 * float(scale)),
        out_shape=jax.ShapeDtypeStruct((3,), jnp.float32),
        grid_spec=grid_spec,
        compiler_params=pltpu.CompilerParams(
            dimension_semantics=("arbitrary",),
            vmem_limit_bytes=48 * 1024 * 1024),
        cost_estimate=cost,
    )(i_idx, j_idx, z_mm, z_mm, norms_col, norms_row)

    s_xx, s_yy, s_xy_both = sums[0], sums[1], sums[2]
    # k_xy.mean() == s_xy_both / (2*N*M)  =>  -2*mean == -s_xy_both/(N*M)
    return s_xx / (n * n) + s_yy / (m * m) - s_xy_both / (n * m)


if __name__ == "__main__":
    key = jax.random.PRNGKey(0)
    kx, ky = jax.random.split(key)

    # Small shapes consistent with the module: N=M=8 samples, hidden=32.
    x = jax.random.normal(kx, (8, 32), dtype=jnp.float32)
    y = jax.random.normal(ky, (8, 32), dtype=jnp.float32)

    out = jax.block_until_ready(mmd_loss(x, y, scale=1.0))
    ref = _mmd_reference(x, y, scale=1.0)
    assert jnp.allclose(out, ref, rtol=1e-5, atol=1e-5), (out, ref)

    # Exercise the symmetric multi-tile path as well (2x2 tile grid ->
    # 3 triangular steps, x/y boundary inside a tile, zero-padded rows,
    # N != M, non-default scale).
    kx2, ky2 = jax.random.split(ky)
    x2 = jax.random.normal(kx2, (80, 32), dtype=jnp.float32)
    y2 = jax.random.normal(ky2, (72, 32), dtype=jnp.float32)
    out2 = jax.block_until_ready(mmd_loss(x2, y2, scale=0.5, tile=128))
    ref2 = _mmd_reference(x2, y2, scale=0.5)
    assert jnp.allclose(out2, ref2, rtol=1e-5, atol=1e-5), (out2, ref2)

    print("KERNEL_OK")
</pallas_src>

<mosaic_0001>
module attributes {stable_mosaic.version = 11 : i64} {
  func.func @_mmd_kernel(%arg0: i32, %arg1: memref<1xi32, #tpu.memory_space<smem>>, %arg2: memref<1xi32, #tpu.memory_space<smem>>, %arg3: memref<16x128xf32, #tpu.memory_space<vmem>>, %arg4: memref<16x128xf32, #tpu.memory_space<vmem>>, %arg5: memref<16x1xf32, #tpu.memory_space<vmem>>, %arg6: memref<1x16xf32, #tpu.memory_space<vmem>>, %arg7: memref<3xf32, #tpu.memory_space<smem>>, %arg8: memref<1x16xf32, #tpu.memory_space<vmem>>, %arg9: memref<1x16xf32, #tpu.memory_space<vmem>>, %arg10: memref<1x16xf32, #tpu.memory_space<vmem>>) attributes {dimension_semantics = [#tpu.dimension_semantics<arbitrary>], iteration_bounds = array<i64: 1>, scalar_prefetch = 2 : i64, scratch_operands = 3 : i64, tpu.core_type = #tpu.core_type<tc>, window_params = [{transform_indices = @transform_0, window_bounds = array<i64: 16, 128>}, {transform_indices = @transform_1, window_bounds = array<i64: 16, 128>}, {transform_indices = @transform_2, window_bounds = array<i64: 16, 1>}, {transform_indices = @transform_3, window_bounds = array<i64: 1, 16>}, {transform_indices = @transform_4, window_bounds = array<i64: 3>}]} {
    %0 = arith.index_cast %arg0 : i32 to index
    %1 = memref.load %arg1[%0] : memref<1xi32, #tpu.memory_space<smem>>
    %2 = arith.index_cast %arg0 : i32 to index
    %3 = memref.load %arg2[%2] : memref<1xi32, #tpu.memory_space<smem>>
    %c0_i32 = arith.constant 0 : i32
    %4 = arith.cmpi eq, %arg0, %c0_i32 : i32
    %5 = arith.extui %4 : i1 to i32
    %c0_i32_0 = arith.constant 0 : i32
    %6 = arith.cmpi ne, %5, %c0_i32_0 : i32
    scf.if %6 {
      %cst_33 = arith.constant 0.000000e+00 : f32
      %82 = vector.broadcast %cst_33 : f32 to vector<1x16xf32>
      %c0_34 = arith.constant 0 : index
      %c0_35 = arith.constant 0 : index
      %83 = vector.load %arg8[%c0_34, %c0_35] : memref<1x16xf32, #tpu.memory_space<vmem>>, vector<1x16xf32>
      tpu.vector_store %arg8[%c0_34, %c0_35], %82 {strides = array<i32>} : memref<1x16xf32, #tpu.memory_space<vmem>>, vector<1x16xf32>,
      %cst_36 = arith.constant 0.000000e+00 : f32
      %84 = vector.broadcast %cst_36 : f32 to vector<1x16xf32>
      %c0_37 = arith.constant 0 : index
      %c0_38 = arith.constant 0 : index
      %85 = vector.load %arg9[%c0_37, %c0_38] : memref<1x16xf32, #tpu.memory_space<vmem>>, vector<1x16xf32>
      tpu.vector_store %arg9[%c0_37, %c0_38], %84 {strides = array<i32>} : memref<1x16xf32, #tpu.memory_space<vmem>>, vector<1x16xf32>,
      %cst_39 = arith.constant 0.000000e+00 : f32
      %86 = vector.broadcast %cst_39 : f32 to vector<1x16xf32>
      %c0_40 = arith.constant 0 : index
      %c0_41 = arith.constant 0 : index
      %87 = vector.load %arg10[%c0_40, %c0_41] : memref<1x16xf32, #tpu.memory_space<vmem>>, vector<1x16xf32>
      tpu.vector_store %arg10[%c0_40, %c0_41], %86 {strides = array<i32>} : memref<1x16xf32, #tpu.memory_space<vmem>>, vector<1x16xf32>,
    } else {
    }
    %c0 = arith.constant 0 : index
    %c0_1 = arith.constant 0 : index
    %7 = vector.load %arg3[%c0, %c0_1] : memref<16x128xf32, #tpu.memory_space<vmem>>, vector<16x128xf32>
    %c0_2 = arith.constant 0 : index
    %c0_3 = arith.constant 0 : index
    %8 = vector.load %arg4[%c0_2, %c0_3] : memref<16x128xf32, #tpu.memory_space<vmem>>, vector<16x128xf32>
    %cst = arith.constant dense<0.000000e+00> : vector<16x16xf32>
    %9 = tpu.matmul %7, %8, %cst {dimension_numbers = #tpu.dot_dimension_numbers<[1], [1], [0], [0], [0, 0, 1, 0], [], []>} : vector<16x128xf32>, vector<16x128xf32>, vector<16x16xf32> -> vector<16x16xf32>
    %cst_4 = arith.constant 2.000000e+00 : f32
    %10 = vector.broadcast %cst_4 : f32 to vector<16x16xf32>
    %11 = arith.mulf %10, %9 : vector<16x16xf32>
    %c0_5 = arith.constant 0 : index
    %c0_6 = arith.constant 0 : index
    %12 = vector.load %arg5[%c0_5, %c0_6] : memref<16x1xf32, #tpu.memory_space<vmem>>, vector<16x1xf32>
    %13 = vector.broadcast %12 : vector<16x1xf32> to vector<16x16xf32>
    %14 = arith.addf %11, %13 : vector<16x16xf32>
    %c0_7 = arith.constant 0 : index
    %c0_8 = arith.constant 0 : index
    %15 = vector.load %arg6[%c0_7, %c0_8] : memref<1x16xf32, #tpu.memory_space<vmem>>, vector<1x16xf32>
    %16 = vector.broadcast %15 : vector<1x16xf32> to vector<16x16xf32>
    %17 = arith.addf %14, %16 : vector<16x16xf32>
    %18 = math.exp %17 : vector<16x16xf32>
    %c16_i32 = arith.constant 16 : i32
    %19 = arith.muli %1, %c16_i32 : i32
    %20 = tpu.iota {dimensions = array<i32: 0>} : vector<16x1xi32>
    %21 = vector.broadcast %19 : i32 to vector<16x1xi32>
    %22 = arith.addi %21, %20 : vector<16x1xi32>
    %c16_i32_9 = arith.constant 16 : i32
    %23 = arith.muli %3, %c16_i32_9 : i32
    %24 = tpu.iota {dimensions = array<i32: 1>} : vector<1x16xi32>
    %25 = vector.broadcast %23 : i32 to vector<1x16xi32>
    %26 = arith.addi %25, %24 : vector<1x16xi32>
    %c8_i32 = arith.constant 8 : i32
    %27 = vector.broadcast %c8_i32 : i32 to vector<16x1xi32>
    %28 = arith.cmpi slt, %22, %27 : vector<16x1xi32>
    %29 = arith.extui %28 : vector<16x1xi1> to vector<16x1xi32>
    %30 = arith.sitofp %29 : vector<16x1xi32> to vector<16x1xf32>
    %c8_i32_10 = arith.constant 8 : i32
    %31 = vector.broadcast %c8_i32_10 : i32 to vector<16x1xi32>
    %32 = arith.cmpi sge, %22, %31 : vector<16x1xi32>
    %c16_i32_11 = arith.constant 16 : i32
    %33 = vector.broadcast %c16_i32_11 : i32 to vector<16x1xi32>
    %34 = arith.cmpi slt, %22, %33 : vector<16x1xi32>
    %35 = arith.andi %32, %34 : vector<16x1xi1>
    %36 = arith.extui %35 : vector<16x1xi1> to vector<16x1xi32>
    %37 = arith.sitofp %36 : vector<16x1xi32> to vector<16x1xf32>
    %c8_i32_12 = arith.constant 8 : i32
    %38 = vector.broadcast %c8_i32_12 : i32 to vector<1x16xi32>
    %39 = arith.cmpi slt, %26, %38 : vector<1x16xi32>
    %40 = arith.extui %39 : vector<1x16xi1> to vector<1x16xi32>
    %41 = arith.sitofp %40 : vector<1x16xi32> to vector<1x16xf32>
    %c8_i32_13 = arith.constant 8 : i32
    %42 = vector.broadcast %c8_i32_13 : i32 to vector<1x16xi32>
    %43 = arith.cmpi sge, %26, %42 : vector<1x16xi32>
    %c16_i32_14 = arith.constant 16 : i32
    %44 = vector.broadcast %c16_i32_14 : i32 to vector<1x16xi32>
    %45 = arith.cmpi slt, %26, %44 : vector<1x16xi32>
    %46 = arith.andi %43, %45 : vector<1x16xi1>
    %47 = arith.extui %46 : vector<1x16xi1> to vector<1x16xi32>
    %48 = arith.sitofp %47 : vector<1x16xi32> to vector<1x16xf32>
    %49 = vector.broadcast %30 : vector<16x1xf32> to vector<16x16xf32>
    %50 = arith.mulf %18, %49 : vector<16x16xf32>
    %cst_15 = arith.constant dense<0.000000e+00> : vector<16xf32>
    %51 = vector.multi_reduction <add>, %50, %cst_15 [0] : vector<16x16xf32> to vector<16xf32>
    %52 = vector.shape_cast %51 : vector<16xf32> to vector<1x16xf32>
    %53 = vector.broadcast %37 : vector<16x1xf32> to vector<16x16xf32>
    %54 = arith.mulf %18, %53 : vector<16x16xf32>
    %cst_16 = arith.constant dense<0.000000e+00> : vector<16xf32>
    %55 = vector.multi_reduction <add>, %54, %cst_16 [0] : vector<16x16xf32> to vector<16xf32>
    %56 = vector.shape_cast %55 : vector<16xf32> to vector<1x16xf32>
    %57 = arith.cmpi eq, %1, %3 : i32
    %cst_17 = arith.constant 1.000000e+00 : f32
    %cst_18 = arith.constant 2.000000e+00 : f32
    %58 = arith.select %57, %cst_17, %cst_18 : f32
    %c0_19 = arith.constant 0 : index
    %c0_20 = arith.constant 0 : index
    %59 = vector.load %arg8[%c0_19, %c0_20] : memref<1x16xf32, #tpu.memory_space<vmem>>, vector<1x16xf32>
    %60 = arith.mulf %52, %41 : vector<1x16xf32>
    %61 = vector.broadcast %58 : f32 to vector<1x16xf32>
    %62 = arith.mulf %61, %60 : vector<1x16xf32>
    %63 = arith.addf %59, %62 : vector<1x16xf32>
    %c0_21 = arith.constant 0 : index
    %c0_22 = arith.constant 0 : index
    %64 = vector.load %arg8[%c0_21, %c0_22] : memref<1x16xf32, #tpu.memory_space<vmem>>, vector<1x16xf32>
    tpu.vector_store %arg8[%c0_21, %c0_22], %63 {strides = array<i32>} : memref<1x16xf32, #tpu.memory_space<vmem>>, vector<1x16xf32>,
    %c0_23 = arith.constant 0 : index
    %c0_24 = arith.constant 0 : index
    %65 = vector.load %arg9[%c0_23, %c0_24] : memref<1x16xf32, #tpu.memory_space<vmem>>, vector<1x16xf32>
    %66 = arith.mulf %56, %48 : vector<1x16xf32>
    %67 = vector.broadcast %58 : f32 to vector<1x16xf32>
    %68 = arith.mulf %67, %66 : vector<1x16xf32>
    %69 = arith.addf %65, %68 : vector<1x16xf32>
    %c0_25 = arith.constant 0 : index
    %c0_26 = arith.constant 0 : index
    %70 = vector.load %arg9[%c0_25, %c0_26] : memref<1x16xf32, #tpu.memory_space<vmem>>, vector<1x16xf32>
    tpu.vector_store %arg9[%c0_25, %c0_26], %69 {strides = array<i32>} : memref<1x16xf32, #tpu.memory_space<vmem>>, vector<1x16xf32>,
    %c0_27 = arith.constant 0 : index
    %c0_28 = arith.constant 0 : index
    %71 = vector.load %arg10[%c0_27, %c0_28] : memref<1x16xf32, #tpu.memory_space<vmem>>, vector<1x16xf32>
    %72 = arith.mulf %52, %48 : vector<1x16xf32>
    %73 = arith.mulf %56, %41 : vector<1x16xf32>
    %74 = arith.addf %72, %73 : vector<1x16xf32>
    %75 = vector.broadcast %58 : f32 to vector<1x16xf32>
    %76 = arith.mulf %75, %74 : vector<1x16xf32>
    %77 = arith.addf %71, %76 : vector<1x16xf32>
    %c0_29 = arith.constant 0 : index
    %c0_30 = arith.constant 0 : index
    %78 = vector.load %arg10[%c0_29, %c0_30] : memref<1x16xf32, #tpu.memory_space<vmem>>, vector<1x16xf32>
    tpu.vector_store %arg10[%c0_29, %c0_30], %77 {strides = array<i32>} : memref<1x16xf32, #tpu.memory_space<vmem>>, vector<1x16xf32>,
    %c0_i32_31 = arith.constant 0 : i32
    %79 = arith.cmpi eq, %arg0, %c0_i32_31 : i32
    %80 = arith.extui %79 : i1 to i32
    %c0_i32_32 = arith.constant 0 : i32
    %81 = arith.cmpi ne, %80, %c0_i32_32 : i32
    scf.if %81 {
      %c0_33 = arith.constant 0 : index
      %c0_34 = arith.constant 0 : index
      %82 = vector.load %arg8[%c0_33, %c0_34] : memref<1x16xf32, #tpu.memory_space<vmem>>, vector<1x16xf32>
      %83 = vector.shape_cast %82 : vector<1x16xf32> to vector<1x1x16xf32>
      %cst_35 = arith.constant dense<0.000000e+00> : vector<1xf32>
      %84 = vector.multi_reduction <add>, %83, %cst_35 [1, 2] : vector<1x1x16xf32> to vector<1xf32>
      %85 = vector.shape_cast %84 : vector<1xf32> to vector<1x1x1xf32>
      %86 = vector.extract %85[0, 0, 0] : f32 from vector<1x1x1xf32>
      %c0_36 = arith.constant 0 : index
      %87 = memref.load %arg7[%c0_36] : memref<3xf32, #tpu.memory_space<smem>>
      memref.store %86, %arg7[%c0_36] : memref<3xf32, #tpu.memory_space<smem>>
      %c0_37 = arith.constant 0 : index
      %c0_38 = arith.constant 0 : index
      %88 = vector.load %arg9[%c0_37, %c0_38] : memref<1x16xf32, #tpu.memory_space<vmem>>, vector<1x16xf32>
      %89 = vector.shape_cast %88 : vector<1x16xf32> to vector<1x1x16xf32>
      %cst_39 = arith.constant dense<0.000000e+00> : vector<1xf32>
      %90 = vector.multi_reduction <add>, %89, %cst_39 [1, 2] : vector<1x1x16xf32> to vector<1xf32>
      %91 = vector.shape_cast %90 : vector<1xf32> to vector<1x1x1xf32>
      %92 = vector.extract %91[0, 0, 0] : f32 from vector<1x1x1xf32>
      %c1 = arith.constant 1 : index
      %93 = memref.load %arg7[%c1] : memref<3xf32, #tpu.memory_space<smem>>
      memref.store %92, %arg7[%c1] : memref<3xf32, #tpu.memory_space<smem>>
      %c0_40 = arith.constant 0 : index
      %c0_41 = arith.constant 0 : index
      %94 = vector.load %arg10[%c0_40, %c0_41] : memref<1x16xf32, #tpu.memory_space<vmem>>, vector<1x16xf32>
      %95 = vector.shape_cast %94 : vector<1x16xf32> to vector<1x1x16xf32>
      %cst_42 = arith.constant dense<0.000000e+00> : vector<1xf32>
      %96 = vector.multi_reduction <add>, %95, %cst_42 [1, 2] : vector<1x1x16xf32> to vector<1xf32>
      %97 = vector.shape_cast %96 : vector<1xf32> to vector<1x1x1xf32>
      %98 = vector.extract %97[0, 0, 0] : f32 from vector<1x1x1xf32>
      %c2 = arith.constant 2 : index
      %99 = memref.load %arg7[%c2] : memref<3xf32, #tpu.memory_space<smem>>
      memref.store %98, %arg7[%c2] : memref<3xf32, #tpu.memory_space<smem>>
    } else {
    }
    return
  }
  func.func @transform_0(%arg0: i32, %arg1: memref<1xi32, #tpu.memory_space<smem>>, %arg2: memref<1xi32, #tpu.memory_space<smem>>) -> (i32, i32) {
    %0 = arith.index_cast %arg0 : i32 to index
    %1 = memref.load %arg1[%0] : memref<1xi32, #tpu.memory_space<smem>>
    %c0_i32 = arith.constant 0 : i32
    %c0_i32_0 = arith.constant 0 : i32
    return %1, %c0_i32 : i32, i32
  }
  func.func @transform_1(%arg0: i32, %arg1: memref<1xi32, #tpu.memory_space<smem>>, %arg2: memref<1xi32, #tpu.memory_space<smem>>) -> (i32, i32) {
    %0 = arith.index_cast %arg0 : i32 to index
    %1 = memref.load %arg2[%0] : memref<1xi32, #tpu.memory_space<smem>>
    %c0_i32 = arith.constant 0 : i32
    %c0_i32_0 = arith.constant 0 : i32
    return %1, %c0_i32 : i32, i32
  }
  func.func @transform_2(%arg0: i32, %arg1: memref<1xi32, #tpu.memory_space<smem>>, %arg2: memref<1xi32, #tpu.memory_space<smem>>) -> (i32, i32) {
    %0 = arith.index_cast %arg0 : i32 to index
    %1 = memref.load %arg1[%0] : memref<1xi32, #tpu.memory_space<smem>>
    %c0_i32 = arith.constant 0 : i32
    %c0_i32_0 = arith.constant 0 : i32
    return %1, %c0_i32 : i32, i32
  }
  func.func @transform_3(%arg0: i32, %arg1: memref<1xi32, #tpu.memory_space<smem>>, %arg2: memref<1xi32, #tpu.memory_space<smem>>) -> (i32, i32) {
    %0 = arith.index_cast %arg0 : i32 to index
    %1 = memref.load %arg2[%0] : memref<1xi32, #tpu.memory_space<smem>>
    %c0_i32 = arith.constant 0 : i32
    %c0_i32_0 = arith.constant 0 : i32
    return %c0_i32, %1 : i32, i32
  }
  func.func @transform_4(%arg0: i32, %arg1: memref<1xi32, #tpu.memory_space<smem>>, %arg2: memref<1xi32, #tpu.memory_space<smem>>) -> i32 {
    %c0_i32 = arith.constant 0 : i32
    %c0_i32_0 = arith.constant 0 : i32
    return %c0_i32 : i32
  }
}

</mosaic_0001>

<bundles_post_ra>
// kernel: tpu_custom_call.1
= control target key start
LH: loop header
LB: loop body
LE: loop exit
PB: predicated region body
PF: predicated region fallthrough
CT: control target
= control target key end

     0   :  { %13 = vsyncpa [#allocation9], 0  ;;  %s507_s0 = inlined_call_operand.<no memory space> [shape: s32[1], index: 0, kind: input, shape index: {}]   ;;  %s508_s1 = inlined_call_operand.<no memory space> [shape: s32[1], index: 1, kind: input, shape index: {}]   ;;  %s509_s2 = inlined_call_operand.vmem [shape: f32[16,128], index: 2, kind: input, shape index: {}]   ;;  %s510_s3 = inlined_call_operand.hbm [shape: f32[16,128], index: 3, kind: input, shape index: {}]   ;;  %s511_s4 = inlined_call_operand.vmem [shape: f32[16,1], index: 4, kind: input, shape index: {}]   ;;  %s512_s5 = inlined_call_operand.vmem [shape: f32[1,16], index: 5, kind: input, shape index: {}]   ;;  %s513_s6 = inlined_call_operand.hbm [shape: f32[3], index: 6, kind: output, shape index: {}]  }
   0x1   :  { %14 = vsyncpa [#allocation10], 0  ;;  %s334_s23 = sshll.u32 %s508_s1, 4  ;;  %s395_s29 = smov [#allocation8]  }
   0x2   :  { %s32_s28 = scalar_lea.hbm %s510_s3, %s334_s23  ;;  %s35_s30 = sshll.u32 %s395_s29, 4  ;;  %s36_s30 = int_to_ptr.vmem [resolvable:$true] %s35_s30 }
   0x3   :  { %s33_s7 = sshll.u32 %s32_s28, 4  ;;  %s359_s12 = scalar_lea.hbm %s510_s3, 16  ;;  %s34_s7 = int_to_ptr.hbm [resolvable:$true] %s33_s7 }
   0x4   :  { %s355_s8 = sshra.s32 %s34_s7, 4  ;;  %s356_s8 = int_to_ptr.hbm [resolvable:$true] %s355_s8 }
   0x5   :  { %s357_s9 = scalar_lea.hbm %s356_s8, 16  ;;  %p360_p1 = scmp.lt.s32.totalorder %s356_s8, %s510_s3 }
   0x6   :  { %p358_p0 = scmp.ne.s32.totalorder %s356_s8, %s357_s9  ;;  %p361_p2 = scmp.lt.s32.totalorder %s359_s12, %s357_s9 }
   0x8   :  { %p362_p3 = por %p361_p2, %p360_p1 }
   0xa   :  { %p363_p4 = pnand %p362_p3, %p358_p0 }
   0xc   :  { %366 = shalt.err (!%p363_p4)
}
   0xd   :  { %s396_s15 = smov 128   ;;  %s397_s16 = smov 8  }
   0xe   :  { %41 = dma.hbm_to_vmem [thread:$0]  %s34_s7, 256, %s36_s30, [#allocation9], %s396_s15, %s396_s15, %s397_s16  }
   0xf   :  { %391 = dma.done.wait [#allocation9], 256  }
  0x10   :  { %392 = vsyncadd [#allocation9], 4294967040  ;;  %s322_s19 = sshll.u32 %s507_s0, 1  ;;  %v398_v0 = vmov 0   ;;  %p98_p6 = scmp.lt.s32.totalorder %s508_s1, 0  ;;  %v115_v1 = vld [vmem:[#allocation8 + $0x8] sm:$0xff]  ;;  %v166_v8 = vlaneseq  ;;  %v175_v38 = vstv %s334_s23 }
  0x11   :  { %349 = vset.pattern.permute.xlu0 %v398_v0  ;;  %p81_p5 = scmp.lt.s32.totalorder %s322_s19, 1  ;;  %130 = vmatpush.xpose.msra.mxu0 %v115_v1  ;;  %v114_v3 = vld [vmem:[#allocation8] sm:$0xff]  ;;  %s326_s12 = sshll.u32 %s507_s0, 4  ;;  %vm108_vm0 = vcmask 122880   ;;  %v399_v10 = vmov 0.0   ;;  %vm203_vm9 = vcmask 130048  }
  0x12   :  { %s464_s28 = scalar_select %p98_p6, %s508_s1, 0  ;;  %335 = vmatpush.xpose.msra.mxu1 %v115_v1  ;;  %v167_v9 = vshrl.u32 %v166_v8, 7  ;;  %109 = vst.msk [vmem:[#allocation2] sm:$0x1] %vm108_vm0, %v399_v10  ;;  %v169_v12 = vstv %s326_s12  ;;  %v174_v35 = vand.u32 127, %v166_v8 }
  0x13   :  { %s515_s19 = smov (!%p81_p5, %s322_s19), 1  ;;  %110 = vst.msk [vmem:[#allocation3] sm:$0x1] %vm108_vm0, %v399_v10  ;;  %p224_p7 = scmp.eq.s32.totalorder %s507_s0, %s508_s1 }
  0x14   :  { %s323_s3 = sshll.u32 %s515_s19, 3  ;;  %v168_v14 = vadd.s32 8, %v167_v9  ;;  %111 = vst.msk [vmem:[#allocation4] sm:$0x1] %vm108_vm0, %v399_v10  ;;  %v170_v20 = vadd.s32 %v169_v12, %v167_v9  ;;  %v176_v45 = vadd.s32 %v175_v38, %v174_v35  ;;  %s292_s18 = sshll.u32 %s513_s6, 4  ;;  %s293_s18 = int_to_ptr.hbm [resolvable:$true] %s292_s18 }
  0x15   :  { %s94_s25 = scalar_lea.vmem %s511_s4, %s323_s3  ;;  %s84_s7 = scalar_lea.vmem %s509_s2, %s323_s3  ;;  %131 = vmatpush.xpose.msra.mxu0 %v114_v3 }
  0x16   :  { %v141_v2 = vld [vmem:[%s94_s25] sm:$0xff]  ;;  %s100_s4 = scalar_lea.vmem %s512_s5, %s464_s28  ;;  %336 = vmatpush.xpose.msra.mxu1 %v114_v3  ;;  %v113_v5 = vld [vmem:[%s84_s7 + $0x8] sm:$0xff]  ;;  %v171_v22 = vadd.s32 %v169_v12, %v168_v14  ;;  %vm183_vm1 = vcmp.ge.s32.totalorder %v170_v20, 8  ;;  %vm185_vm2 = vcmp.lt.s32.totalorder %v170_v20, 16  ;;  %vm177_vm5 = vcmp.lt.s32.totalorder %v170_v20, 8  ;;  %s400_s21 = smov [#allocation11]  }
  0x17   :  { %145 = vperm.xlu0 %349, %v141_v2   ;;  %v112_v4 = vld [vmem:[%s84_s7] sm:$0xff]  ;;  %v142_v6 = vld [vmem:[%s94_s25 + $0x8] sm:$0xff]  ;;  %vm187_vm6 = vmand %vm183_vm1, %vm185_vm2  ;;  %v328_v27 = vsel %vm177_vm5, 1.0, %v399_v10  ;;  %vm196_vm10 = vcmp.ge.s32.totalorder %v176_v45, 8  ;;  %vm197_vm11 = vcmp.lt.s32.totalorder %v176_v45, 16  ;;  %vm193_vm12 = vcmp.lt.s32.totalorder %v176_v45, 8 }
  0x18   :  { %132 = vmatmul.f32.vlgmr.msra.gmra.mxu0 %v112_v4  ;;  %v350_v16 = vld [vmem:[%s100_s4] ss:$0 sm:$0xff]  ;;  %vm184_vm3 = vcmp.ge.s32.totalorder %v171_v22, 8  ;;  %vm186_vm4 = vcmp.lt.s32.totalorder %v171_v22, 16  ;;  %vm178_vm7 = vcmp.lt.s32.totalorder %v171_v22, 8  ;;  %v330_v28 = vsel %vm187_vm6, 1.0, %v399_v10  ;;  %vm198_vm13 = vmand %vm196_vm10, %vm197_vm11 }
  0x19   :  { %135 = vmatmul.f32.vlgmr.msra.gmra.mxu1 %v113_v5  ;;  %vm188_vm8 = vmand %vm184_vm3, %vm186_vm4  ;;  %v329_v29 = vsel %vm178_vm7, 1.0, %v399_v10  ;;  %s225_s23 = scalar_select %p224_p7, 1.0, 2.0  ;;  %v332_v56 = vsel %vm193_vm12, 1.0, %v399_v10  ;;  %v333_v57 = vsel %vm198_vm13, 1.0, %v399_v10 }
  0x1a   :  { %v331_v30 = vsel %vm188_vm8, 1.0, %v399_v10  ;;  %v226_v1 = vld [vmem:[#allocation2] sm:$0x1]  ;;  %v233_v2 = vld [vmem:[#allocation3] sm:$0x1] }
  0x1b   :  { %v228_v60 = vstv %s225_s23 }
  0x1f   :  { %150 = vperm.xlu0 %349, %v142_v6   ;;  %v238_v6 = vld [vmem:[#allocation4] sm:$0x1] }
  0x89   :  { %v146_v7 = vpop.permute.xlu0 %145 }
  0x91   :  { %v151_v18 = vpop.permute.xlu0 %150 }
  0x95   :  { %v133_v11 = vpop.f32.mrf.mxu0 }
  0x96   :  { %v136_v13 = vpop.f32.mrf.mxu1  ;;  %v139_v15 = vmul.f32 2.0, %v133_v11 }
  0x97   :  { %v140_v17 = vmul.f32 2.0, %v136_v13 }
  0x98   :  { %v153_v19 = vadd.f32 %v146_v7, %v139_v15 }
  0x99   :  { %v154_v21 = vadd.f32 %v151_v18, %v140_v17 }
  0x9a   :  { %v159_v23 = vadd.f32 %v350_v16, %v153_v19 }
  0x9b   :  { %v160_v24 = vadd.f32 %v350_v16, %v154_v21 }
  0x9c   :  { %v161_v25 = vmul.f32 1.442695, %v159_v23 }
  0x9d   :  { %v163_v26 = vmul.f32 1.442695, %v160_v24 }
  0x9e   :  { %351 = vpow2.f32 %v161_v25 }
  0x9f   :  { %353 = vpow2.f32 %v163_v26 }
  0xa4   :  { %v352_v31 = vpop.eup %351 }
  0xa5   :  { %v354_v32 = vpop.eup %353  ;;  %v201_v33 = vmul.f32 %v352_v31, %v328_v27  ;;  %v213_v34 = vmul.f32 %v352_v31, %v330_v28 }
  0xa6   :  { %v202_v36 = vmul.f32 %v354_v32, %v329_v29  ;;  %v214_v37 = vmul.f32 %v354_v32, %v331_v30 }
  0xa7   :  { %v204_v39 = vsel %vm203_vm9, %v201_v33, 0.0  ;;  %v215_v40 = vsel %vm203_vm9, %v213_v34, 0.0 }
  0xa8   :  { %v205_v41 = vsel %vm203_vm9, %v202_v36, 0.0  ;;  %v216_v42 = vsel %vm203_vm9, %v214_v37, 0.0 }
  0xa9   :  { %v206_v43 = vadd.f32 %v205_v41, %v204_v39  ;;  %v217_v44 = vadd.f32 %v216_v42, %v215_v40 }
  0xab   :  { %v207_v46 = vrot.slane %v206_v43, 4  ;;  %v218_v47 = vrot.slane %v217_v44, 4 }
  0xad   :  { %v208_v48 = vadd.f32 %v207_v46, %v206_v43  ;;  %v219_v49 = vadd.f32 %v218_v47, %v217_v44 }
  0xaf   :  { %v209_v50 = vrot.slane %v208_v48, 2  ;;  %v220_v51 = vrot.slane %v219_v49, 2 }
  0xb1   :  { %v210_v52 = vadd.f32 %v209_v50, %v208_v48  ;;  %v221_v53 = vadd.f32 %v220_v51, %v219_v49 }
  0xb3   :  { %v211_v54 = vrot.slane %v210_v52, 1  ;;  %v222_v55 = vrot.slane %v221_v53, 1 }
  0xb5   :  { %v212_v58 = vadd.f32 %v211_v54, %v210_v52  ;;  %v223_v59 = vadd.f32 %v222_v55, %v221_v53 }
  0xb7   :  { %v227_v61 = vmul.f32 %v332_v56, %v212_v58  ;;  %v234_v62 = vmul.f32 %v333_v57, %v223_v59  ;;  %v239_v63 = vmul.f32 %v333_v57, %v212_v58  ;;  %v240_v0 = vmul.f32 %v332_v56, %v223_v59 }
  0xb9   :  { %v229_v3 = vmul.f32 %v228_v60, %v227_v61  ;;  %v235_v4 = vmul.f32 %v234_v62, %v228_v60  ;;  %v241_v5 = vadd.f32 %v240_v0, %v239_v63 }
  0xbb   :  { %v242_v7 = vmul.f32 %v241_v5, %v228_v60  ;;  %v230_v8 = vadd.f32 %v229_v3, %v226_v1  ;;  %v236_v9 = vadd.f32 %v235_v4, %v233_v2 }
  0xbd   :  { %232 = vst.msk [vmem:[#allocation2] sm:$0x1] %vm108_vm0, %v230_v8  ;;  %v243_v11 = vadd.f32 %v242_v7, %v238_v6 }
  0xbe   :  { %237 = vst.msk [vmem:[#allocation3] sm:$0x1] %vm108_vm0, %v236_v9 }
  0xbf   :  { %244 = vst.msk [vmem:[#allocation4] sm:$0x1] %vm108_vm0, %v243_v11 }
  0xc4   :  { %v248_v10 = vld [vmem:[#allocation2] sm:$0x1] }
  0xc5   :  { %v249_v12 = vsel %vm108_vm0, %v248_v10, 0.0  ;;  %v261_v15 = vld [vmem:[#allocation3] sm:$0x1] }
  0xc6   :  { %250 = vadd.xlane.f32.xlu1 %v249_v12  ;;  %v274_v13 = vld [vmem:[#allocation4] sm:$0x1]  ;;  %v262_v16 = vsel %vm108_vm0, %v261_v15, 0.0 }
  0xc7   :  { %v275_v14 = vsel %vm108_vm0, %v274_v13, 0.0 }
  0xc8   :  { %276 = vadd.xlane.f32.xlu2 %v275_v14 }
  0xce   :  { %263 = vadd.xlane.f32.xlu1 %v262_v16 }
 0x139   :  { %v251_v17 = vpop.xlane.xlu1 %250 }
 0x13a   :  { %v252_v18 = vrot.slane %v251_v17, 4 }
 0x13b   :  { %v277_v19 = vpop.xlane.xlu2 %276 }
 0x13c   :  { %v253_v20 = vadd.f32 %v252_v18, %v251_v17  ;;  %v278_v21 = vrot.slane %v277_v19, 4 }
 0x13e   :  { %v254_v22 = vrot.slane %v253_v20, 2  ;;  %v279_v23 = vadd.f32 %v278_v21, %v277_v19 }
 0x140   :  { %v255_v24 = vadd.f32 %v254_v22, %v253_v20  ;;  %v280_v25 = vrot.slane %v279_v23, 2 }
 0x141   :  { %v264_v26 = vpop.xlane.xlu1 %263 }
 0x142   :  { %v265_v27 = vrot.slane %v264_v26, 4  ;;  %v256_v28 = vrot.slane %v255_v24, 1  ;;  %v281_v31 = vadd.f32 %v280_v25, %v279_v23 }
 0x144   :  { %v266_v29 = vadd.f32 %v265_v27, %v264_v26  ;;  %v257_v30 = vadd.f32 %v256_v28, %v255_v24  ;;  %v282_v34 = vrot.slane %v281_v31, 1 }
 0x146   :  { %v267_v32 = vrot.slane %v266_v29, 2  ;;  %337 = vpush %v257_v30  ;;  %v283_v37 = vadd.f32 %v282_v34, %v281_v31 }
 0x148   :  { %v268_v33 = vadd.f32 %v267_v32, %v266_v29 }
 0x14a   :  { %v269_v35 = vrot.slane %v268_v33, 1 }
 0x14c   :  { %v270_v36 = vadd.f32 %v269_v35, %v268_v33 }
 0x14e   :  { %339 = vpush %v270_v36 }
 0x14f   :  { %341 = vpush %v283_v37 }
 0x177   :  { %s338_s0 = spop %337 }
 0x178   :  { %260 = sst [smem:[#allocation11]] %s338_s0 }
 0x17f   :  { %s340_s19 = spop %339 }
 0x180   :  { %273 = sst [smem:[#allocation11 + $0x1]] %s340_s19  ;;  %s342_s20 = spop %341 }
 0x181   :  { %286 = sst [smem:[#allocation11 + $0x2]] %s342_s20 }
 0x182   :  { %295 = dma.smem_to_hbm %s400_s21, 16, %s293_s18, [#allocation10]  }
 0x183   :  { %393 = dma.done.wait [#allocation10], 16  }
 0x184   :  { %394 = vsyncadd [#allocation10], 4294967280 }
 0x185   :  { %300 = sfence }
 0x186   :  { %301 = vsyncpa [#allocation9], 1 }
 0x187   :  { %302 = vsyncpa [#allocation10], 1 }

</bundles_post_ra>
